<compile_context>
chip_gen: v7x
topology: tpu7x:2x2x1
jax: 0.10.0
libtpu: 0.0.40
codegen_flags: <defaults>
</compile_context>

<pallas_src>
import functools
import math

import numpy as np
import jax
import jax.numpy as jnp
from jax.experimental import pallas as pl
from jax.experimental.pallas import tpu as pltpu


# ---------------------------------------------------------------------------
# Host-side helpers: PyTorch-compatible source coordinates & interpolation
# matrices, built once per call in numpy.
# ---------------------------------------------------------------------------
def _source_coords(n_in, n_out, align_corners, scale_factor=None):
    """PyTorch upsample_bilinear2d source coords: returns (i0, i1, frac)."""
    out_idx = np.arange(n_out, dtype=np.float64)
    if align_corners:
        if n_out <= 1:
            src = np.zeros((n_out,), dtype=np.float64)
        else:
            src = out_idx * ((n_in - 1) / (n_out - 1))
    else:
        # PyTorch uses 1/scale_factor when scale_factor is given (recompute_scale_factor
        # unset); fall back to n_in/n_out only when no scale is available.
        scale = (1.0 / scale_factor) if (scale_factor is not None and scale_factor > 0) \
            else (n_in / n_out)
        src = np.maximum((out_idx + 0.5) * scale - 0.5, 0.0)
    i0 = np.minimum(np.floor(src).astype(np.int64), n_in - 1)
    i1 = np.minimum(i0 + 1, n_in - 1)
    frac = (src - i0).astype(np.float32)
    return i0, i1, frac


def _interp_matrix(n_in, n_out, align_corners, scale_factor=None):
    """(n_out, n_in) matrix A with  out = A @ in  along one axis (bilinear)."""
    i0, i1, frac = _source_coords(n_in, n_out, align_corners, scale_factor)
    rows = np.arange(n_out)
    A = np.zeros((n_out, n_in), np.float32)
    np.add.at(A, (rows, i0), 1.0 - frac)
    np.add.at(A, (rows, i1), frac)
    return A


def _nearest_matrix(n_in, n_out, scale_factor=None):
    """(n_out, n_in) 0/1 selection matrix for mode='nearest' (legacy formula)."""
    scale = (1.0 / scale_factor) if (scale_factor is not None and scale_factor > 0) \
        else (n_in / n_out)
    idx = np.minimum(np.floor(np.arange(n_out) * scale).astype(np.int64), n_in - 1)
    A = np.zeros((n_out, n_in), np.float32)
    A[np.arange(n_out), idx] = 1.0
    return A


def _pick_batch_chunk(B, H, Ho, WC, WoC, itemsize=4, budget_bytes=8 * 1024 * 1024):
    """Largest divisor-of-B chunk whose per-step operands fit a VMEM budget.

    Chunks smaller than B must keep the row block dims sublane-aligned (8)."""
    smallest_valid = B
    for b in range(B, 0, -1):
        if B % b:
            continue
        if b < B and ((b * H) % 8 or (b * Ho) % 8):
            continue
        smallest_valid = b
        x_b = b * H * WC * itemsize
        o_b = b * Ho * WoC * itemsize
        ahb = (b * Ho) * (b * H) * itemsize
        mw = WC * WoC * itemsize
        need = 2 * (x_b + o_b) + 2 * (ahb + mw)   # double-buffer headroom
        if need <= budget_bytes:
            return b
    return smallest_valid


# ---------------------------------------------------------------------------
# Pallas kernel: one batch-chunk per grid step, two lane-dense MXU dots.
# ---------------------------------------------------------------------------
def _resize_kernel(x_ref, mw_ref, ahb_ref, out_ref, *, compute_dtype):
    # x_ref   : (rows_in,  W*C)       fused channels-last input rows (rows_in = b_chunk*H)
    # mw_ref  : (W*C, Wo*C)           kron(Aw^T, I_C): W-interp in fused layout
    # ahb_ref : (rows_out, rows_in)   kron(I_b_chunk, Ah): H-interp for the whole chunk
    # out_ref : (rows_out, Wo*C)
    x = x_ref[...].astype(compute_dtype)
    # W-interp FIRST: the expensive (*, W*C)@(W*C, Wo*C) contraction runs over the
    # (smaller) H input rows; then the H-interp on the already-widened tile.
    t = jnp.dot(x, mw_ref[...], preferred_element_type=jnp.float32)          # (rows_in, Wo*C)
    y = jnp.dot(ahb_ref[...], t.astype(compute_dtype),
                preferred_element_type=jnp.float32)                          # (rows_out, Wo*C)
    out_ref[...] = y.astype(out_ref.dtype)


def _resize_fused(x_flat, B, H, W, C, Ho, Wo, Ah, Aw, *, out_dtype, compute_dtype):
    """Core resize on fused channels-last rows.

    x_flat : (B*H, W*C)  with x_flat[b*H+h, w*C+c] == x[b, c, h, w]
    returns: (B*Ho, Wo*C) in the same fused layout.
    Channels-last callers should use this directly (no NCHW transposes needed).
    """
    WC, WoC = W * C, Wo * C
    b_chunk = _pick_batch_chunk(B, H, Ho, WC, WoC)
    n_chunks = B // b_chunk

    # Constant weights (constant index_maps -> DMA'd once, reused across grid steps).
    Mw = jnp.asarray(np.kron(Aw.T, np.eye(C, dtype=np.float32)), dtype=compute_dtype)
    AhB = jnp.asarray(np.kron(np.eye(b_chunk, dtype=np.float32), Ah), dtype=compute_dtype)

    kernel = functools.partial(_resize_kernel, compute_dtype=compute_dtype)
    return pl.pallas_call(
        kernel,
        out_shape=jax.ShapeDtypeStruct((B * Ho, WoC), out_dtype),
        grid=(n_chunks,),
        in_specs=[
            pl.BlockSpec((b_chunk * H, WC), lambda i: (i, 0)),           # per-chunk rows
            pl.BlockSpec((WC, WoC), lambda i: (0, 0)),                   # shared Mw
            pl.BlockSpec((b_chunk * Ho, b_chunk * H), lambda i: (0, 0)),  # shared AhB
        ],
        out_specs=pl.BlockSpec((b_chunk * Ho, WoC), lambda i: (i, 0)),
        compiler_params=pltpu.CompilerParams(
            # Megacore sharding only when there is >1 real chunk of work; at a single
            # step "arbitrary" avoids paying per-core launch overhead twice on v7x.
            dimension_semantics=("parallel",) if n_chunks > 1 else ("arbitrary",),
        ),
    )(x_flat, Mw, AhB)


# ---------------------------------------------------------------------------
# Wrapper: NCHW in / NCHW out (PyTorch `Interpolate` semantics).
# ---------------------------------------------------------------------------
def interpolate(x_nchw, scale_factor, mode="bilinear", align_corners=False,
                compute_dtype=jnp.float32):
    B, C, H, W = x_nchw.shape
    if isinstance(scale_factor, (tuple, list)):
        sf_h, sf_w = float(scale_factor[0]), float(scale_factor[1])
    else:
        sf_h = sf_w = float(scale_factor)
    # Same double-precision product + floor as PyTorch's output-size computation.
    Ho = int(math.floor(H * sf_h))
    Wo = int(math.floor(W * sf_w))
    assert Ho >= 1 and Wo >= 1, "output size must be >= 1"

    if mode == "bilinear":
        Ah = _interp_matrix(H, Ho, align_corners, sf_h)   # (Ho, H)
        Aw = _interp_matrix(W, Wo, align_corners, sf_w)   # (Wo, W)
    elif mode == "nearest":
        # align_corners is ignored for nearest (as in PyTorch).
        Ah = _nearest_matrix(H, Ho, sf_h)
        Aw = _nearest_matrix(W, Wo, sf_w)
    else:
        # TODO(synk): 'bicubic' / 'trilinear' / 'area' modes are not implemented.
        raise NotImplementedError(f"mode={mode!r} is not implemented")

    # NCHW -> NHWC -> fuse (W, C) into lanes -> flatten batch rows.
    # TODO(synk): these two transposes are pure layout plumbing for the NCHW API;
    # a channels-last caller should feed _resize_fused directly and skip them.
    x_flat = jnp.transpose(x_nchw, (0, 2, 3, 1)).reshape(B * H, W * C)

    out_flat = _resize_fused(x_flat, B, H, W, C, Ho, Wo, Ah, Aw,
                             out_dtype=x_nchw.dtype, compute_dtype=compute_dtype)

    # (B*Ho, Wo*C) -> NHWC -> NCHW
    return jnp.transpose(out_flat.reshape(B, Ho, Wo, C), (0, 3, 1, 2))


# ---------------------------------------------------------------------------
# Pure-JAX / numpy references (gather-based, PyTorch semantics).
# ---------------------------------------------------------------------------
def _interpolate_ref(x_nchw, scale_factor, align_corners):
    B, C, H, W = x_nchw.shape
    Ho = int(math.floor(H * scale_factor))
    Wo = int(math.floor(W * scale_factor))
    i0h, i1h, fh = _source_coords(H, Ho, align_corners, scale_factor)
    i0w, i1w, fw = _source_coords(W, Wo, align_corners, scale_factor)
    fh = jnp.asarray(fh)[None, None, :, None]
    fw = jnp.asarray(fw)[None, None, None, :]
    xh = x_nchw[:, :, i0h, :] * (1.0 - fh) + x_nchw[:, :, i1h, :] * fh   # (B,C,Ho,W)
    return xh[:, :, :, i0w] * (1.0 - fw) + xh[:, :, :, i1w] * fw          # (B,C,Ho,Wo)


def _nearest_ref(x_nchw, scale_factor):
    B, C, H, W = x_nchw.shape
    Ho = int(math.floor(H * scale_factor))
    Wo = int(math.floor(W * scale_factor))
    ih = np.minimum(np.floor(np.arange(Ho) * (1.0 / scale_factor)).astype(np.int64), H - 1)
    iw = np.minimum(np.floor(np.arange(Wo) * (1.0 / scale_factor)).astype(np.int64), W - 1)
    return x_nchw[:, :, ih, :][:, :, :, iw]


# ---------------------------------------------------------------------------
if __name__ == "__main__":
    # Small shapes consistent with the module's use in the AVSS model; C=8 keeps
    # both fused lane dims full (W*C = 128, Wo*C = 256 -> unmasked vld/vst).
    B, C, H, W = 2, 8, 16, 16
    key = jax.random.PRNGKey(0)
    x = jax.random.normal(key, (B, C, H, W), jnp.float32)

    # Bilinear, both align_corners settings used by the model.
    for align_corners in (False, True):
        out = jax.block_until_ready(
            interpolate(x, scale_factor=2, mode="bilinear", align_corners=align_corners)
        )
        ref = jax.block_until_ready(_interpolate_ref(x, 2, align_corners))
        assert out.shape == (B, C, 2 * H, 2 * W), out.shape
        np.testing.assert_allclose(np.asarray(out), np.asarray(ref), rtol=1e-4, atol=1e-4)

    # Nearest mode (selection matrix path).
    out_n = jax.block_until_ready(interpolate(x, scale_factor=2, mode="nearest"))
    ref_n = _nearest_ref(np.asarray(x), 2)
    np.testing.assert_allclose(np.asarray(out_n), ref_n, rtol=1e-5, atol=1e-5)

    print("KERNEL_OK")
</pallas_src>

<mosaic_0001>
module attributes {stable_mosaic.version = 11 : i64} {
  func.func @_resize_kernel(%arg0: i32, %arg1: memref<32x128xf32, #tpu.memory_space<vmem>>, %arg2: memref<128x256xf32, #tpu.memory_space<vmem>>, %arg3: memref<64x32xf32, #tpu.memory_space<vmem>>, %arg4: memref<64x256xf32, #tpu.memory_space<vmem>>) attributes {dimension_semantics = [#tpu.dimension_semantics<arbitrary>], iteration_bounds = array<i64: 1>, scalar_prefetch = 0 : i64, scratch_operands = 0 : i64, tpu.core_type = #tpu.core_type<tc>, window_params = [{transform_indices = @transform_0, window_bounds = array<i64: 32, 128>}, {pipeline_mode = #tpu.pipeline_mode<synchronous>, transform_indices = @transform_1, window_bounds = array<i64: 128, 256>}, {pipeline_mode = #tpu.pipeline_mode<synchronous>, transform_indices = @transform_2, window_bounds = array<i64: 64, 32>}, {transform_indices = @transform_3, window_bounds = array<i64: 64, 256>}]} {
    %c0 = arith.constant 0 : index
    %c0_0 = arith.constant 0 : index
    %0 = vector.load %arg1[%c0, %c0_0] : memref<32x128xf32, #tpu.memory_space<vmem>>, vector<32x128xf32>
    %c0_1 = arith.constant 0 : index
    %c0_2 = arith.constant 0 : index
    %1 = vector.load %arg2[%c0_1, %c0_2] : memref<128x256xf32, #tpu.memory_space<vmem>>, vector<128x256xf32>
    %cst = arith.constant dense<0.000000e+00> : vector<32x256xf32>
    %2 = tpu.matmul %0, %1, %cst {dimension_numbers = #tpu.dot_dimension_numbers<[1], [0], [0], [1], [0, 0, 1, 1], [], []>} : vector<32x128xf32>, vector<128x256xf32>, vector<32x256xf32> -> vector<32x256xf32>
    %c0_3 = arith.constant 0 : index
    %c0_4 = arith.constant 0 : index
    %3 = vector.load %arg3[%c0_3, %c0_4] : memref<64x32xf32, #tpu.memory_space<vmem>>, vector<64x32xf32>
    %cst_5 = arith.constant dense<0.000000e+00> : vector<64x256xf32>
    %4 = tpu.matmul %3, %2, %cst_5 {dimension_numbers = #tpu.dot_dimension_numbers<[1], [0], [0], [1], [0, 0, 1, 1], [], []>} : vector<64x32xf32>, vector<32x256xf32>, vector<64x256xf32> -> vector<64x256xf32>
    %c0_6 = arith.constant 0 : index
    %c0_7 = arith.constant 0 : index
    %5 = vector.load %arg4[%c0_6, %c0_7] : memref<64x256xf32, #tpu.memory_space<vmem>>, vector<64x256xf32>
    tpu.vector_store %arg4[%c0_6, %c0_7], %4 {strides = array<i32>} : memref<64x256xf32, #tpu.memory_space<vmem>>, vector<64x256xf32>,
    return
  }
  func.func @transform_0(%arg0: i32) -> (i32, i32) {
    %c0_i32 = arith.constant 0 : i32
    %c0_i32_0 = arith.constant 0 : i32
    return %arg0, %c0_i32 : i32, i32
  }
  func.func @transform_1(%arg0: i32) -> (i32, i32) {
    %c0_i32 = arith.constant 0 : i32
    %c0_i32_0 = arith.constant 0 : i32
    %c0_i32_1 = arith.constant 0 : i32
    return %c0_i32, %c0_i32_0 : i32, i32
  }
  func.func @transform_2(%arg0: i32) -> (i32, i32) {
    %c0_i32 = arith.constant 0 : i32
    %c0_i32_0 = arith.constant 0 : i32
    %c0_i32_1 = arith.constant 0 : i32
    return %c0_i32, %c0_i32_0 : i32, i32
  }
  func.func @transform_3(%arg0: i32) -> (i32, i32) {
    %c0_i32 = arith.constant 0 : i32
    %c0_i32_0 = arith.constant 0 : i32
    return %arg0, %c0_i32 : i32, i32
  }
}

</mosaic_0001>

<bundles_post_ra>
// kernel: tpu_custom_call.1
= control target key start
LH: loop header
LB: loop body
LE: loop exit
PB: predicated region body
PF: predicated region fallthrough
CT: control target
= control target key end

     0   :  { %8 = vsyncpa [#allocation3], 0  ;;  %s545_s0 = inlined_call_operand.vmem [shape: f32[32,128], index: 0, kind: input, shape index: {}]   ;;  %s546_s1 = inlined_call_operand.hbm [shape: f32[128,256], index: 1, kind: input, shape index: {}]   ;;  %s547_s2 = inlined_call_operand.vmem [shape: f32[64,32], index: 2, kind: input, shape index: {}]   ;;  %s548_s3 = inlined_call_operand.hbm [shape: f32[64,256], index: 3, kind: output, shape index: {}]  }
   0x1   :  { %9 = vsyncpa [#allocation4], 0  ;;  %s434_s12 = smov [#allocation2]   ;;  %s386_s16 = scalar_lea.hbm %s546_s1, 4096 }
   0x2   :  { %s17_s13 = sshll.u32 %s434_s12, 4  ;;  %p387_p0 = scmp.ne.s32.totalorder %s546_s1, %s386_s16  ;;  %s18_s13 = int_to_ptr.vmem [resolvable:$true] %s17_s13 }
   0x3   :  { %p390_p1 = scmp.lt.u32.totalorder %s386_s16, %s546_s1 }
   0x5   :  { %p392_p2 = pnand %p390_p1, %p387_p0 }
   0x7   :  { %395 = shalt.err (!%p392_p2)
}
   0x8   :  { %s396_s21 = scalar_lea.vmem %s18_s13, 4096  ;;  %p401_p4 = scmp.lt.s32.totalorder %s18_s13, %s18_s13 }
   0x9   :  { %p397_p3 = scmp.ne.s32.totalorder %s18_s13, %s396_s21  ;;  %p402_p5 = scmp.lt.s32.totalorder %s396_s21, %s396_s21 }
   0xb   :  { %p403_p6 = por %p402_p5, %p401_p4 }
   0xd   :  { %p404_p7 = pnand %p403_p6, %p397_p3 }
   0xf   :  { %407 = shalt.err (!%p404_p7)
}
  0x10   :  { %s435_s22 = smov 256   ;;  %s436_s23 = smov 16  }
  0x11   :  { %23 = dma.hbm_to_vmem [thread:$0]  %s546_s1, 4096, %s18_s13, [#allocation3], %s435_s22, %s435_s22, %s436_s23  }
  0x12   :  { %430 = dma.done.wait [#allocation3], 4096  }
  0x13   :  { %431 = vsyncadd [#allocation3], 4294963200  ;;  %v437_v0 = vmov 0.0   ;;  %v34_v1 = vld [vmem:[#allocation2 + $0x8] sm:$0xff]  ;;  %v36_v2 = vld [vmem:[#allocation2 + $0x18] sm:$0xff]  ;;  %vm162_vm0 = vcmask 261120  }
  0x14   :  { %129 = vmatprep.mubr.f32.mxu0 %v437_v0  ;;  %251 = vmatprep.mubr.f32.mxu1 %v437_v0  ;;  %v33_v3 = vld [vmem:[#allocation2] sm:$0xff]  ;;  %v341_v4 = vpack.c.bf16 %v36_v2, %v34_v1  ;;  %v35_v5 = vld [vmem:[#allocation2 + $0x10] sm:$0xff]  ;;  %v38_v6 = vld [vmem:[#allocation2 + $0x28] sm:$0xff] }
  0x15   :  { %v40_v7 = vld [vmem:[#allocation2 + $0x38] sm:$0xff]  ;;  %v343_v8 = vpack.c.bf16 %v35_v5, %v33_v3  ;;  %v37_v10 = vld [vmem:[#allocation2 + $0x20] sm:$0xff]  ;;  %v39_v11 = vld [vmem:[#allocation2 + $0x30] sm:$0xff] }
  0x16   :  { %v345_v9 = vpack.c.bf16 %v40_v7, %v38_v6  ;;  %v42_v12 = vld [vmem:[#allocation2 + $0x48] sm:$0xff]  ;;  %342 = vmatprep.subr.bf16.mxu0 %v341_v4  ;;  %v44_v13 = vld [vmem:[#allocation2 + $0x58] sm:$0xff]  ;;  %v347_v14 = vpack.c.bf16 %v39_v11, %v37_v10  ;;  %v41_v16 = vld [vmem:[#allocation2 + $0x40] sm:$0xff] }
  0x17   :  { %344 = vmatpush1.bf16.msra.mxu0 %v343_v8  ;;  %v349_v15 = vpack.c.bf16 %v44_v13, %v42_v12  ;;  %v43_v17 = vld [vmem:[#allocation2 + $0x50] sm:$0xff]  ;;  %v46_v18 = vld [vmem:[#allocation2 + $0x68] sm:$0xff]  ;;  %v48_v19 = vld [vmem:[#allocation2 + $0x78] sm:$0xff] }
  0x18   :  { %346 = vmatprep.subr.bf16.mxu0 %v345_v9  ;;  %v351_v20 = vpack.c.bf16 %v43_v17, %v41_v16  ;;  %v353_v21 = vpack.c.bf16 %v48_v19, %v46_v18  ;;  %v45_v22 = vld [vmem:[#allocation2 + $0x60] sm:$0xff]  ;;  %v47_v23 = vld [vmem:[#allocation2 + $0x70] sm:$0xff]  ;;  %v50_v24 = vld [vmem:[#allocation2 + $0x88] sm:$0xff] }
  0x19   :  { %v52_v25 = vld [vmem:[#allocation2 + $0x98] sm:$0xff]  ;;  %v355_v26 = vpack.c.bf16 %v47_v23, %v45_v22  ;;  %v49_v28 = vld [vmem:[#allocation2 + $0x80] sm:$0xff]  ;;  %v51_v29 = vld [vmem:[#allocation2 + $0x90] sm:$0xff] }
  0x1a   :  { %v357_v27 = vpack.c.bf16 %v52_v25, %v50_v24  ;;  %v54_v30 = vld [vmem:[#allocation2 + $0xa8] sm:$0xff]  ;;  %v56_v31 = vld [vmem:[#allocation2 + $0xb8] sm:$0xff]  ;;  %v359_v32 = vpack.c.bf16 %v51_v29, %v49_v28  ;;  %v53_v34 = vld [vmem:[#allocation2 + $0xa0] sm:$0xff] }
  0x1b   :  { %348 = vmatpush1.bf16.msra.mxu0 %v347_v14  ;;  %v361_v33 = vpack.c.bf16 %v56_v31, %v54_v30  ;;  %v55_v35 = vld [vmem:[#allocation2 + $0xb0] sm:$0xff]  ;;  %v58_v36 = vld [vmem:[#allocation2 + $0xc8] sm:$0xff]  ;;  %v60_v37 = vld [vmem:[#allocation2 + $0xd8] sm:$0xff] }
  0x1c   :  { %350 = vmatprep.subr.bf16.mxu0 %v349_v15  ;;  %v363_v38 = vpack.c.bf16 %v55_v35, %v53_v34  ;;  %v365_v39 = vpack.c.bf16 %v60_v37, %v58_v36  ;;  %v57_v40 = vld [vmem:[#allocation2 + $0xc0] sm:$0xff]  ;;  %v59_v41 = vld [vmem:[#allocation2 + $0xd0] sm:$0xff]  ;;  %v62_v42 = vld [vmem:[#allocation2 + $0xe8] sm:$0xff] }
  0x1d   :  { %v64_v43 = vld [vmem:[#allocation2 + $0xf8] sm:$0xff]  ;;  %v367_v44 = vpack.c.bf16 %v59_v41, %v57_v40  ;;  %v61_v46 = vld [vmem:[#allocation2 + $0xe0] sm:$0xff]  ;;  %v63_v47 = vld [vmem:[#allocation2 + $0xf0] sm:$0xff] }
  0x1e   :  { %v369_v45 = vpack.c.bf16 %v64_v43, %v62_v42  ;;  %v371_v48 = vpack.c.bf16 %v63_v47, %v61_v46  ;;  %v29_v49 = vld [vmem:[%s545_s0] sm:$0xff]  ;;  %v30_v50 = vld [vmem:[%s545_s0 + $0x8] sm:$0xff]  ;;  %v31_v51 = vld [vmem:[%s545_s0 + $0x10] sm:$0xff] }
  0x1f   :  { %352 = vmatpush1.bf16.msra.mxu0 %v351_v20  ;;  %v32_v52 = vld [vmem:[%s545_s0 + $0x18] sm:$0xff]  ;;  %v154_v2 = vld [vmem:[%s547_s2] sm:$0xff]  ;;  %v155_v3 = vld [vmem:[%s547_s2 + $0x8] sm:$0xff] }
  0x20   :  { %354 = vmatprep.subr.bf16.mxu0 %v353_v21  ;;  %v156_v4 = vld [vmem:[%s547_s2 + $0x10] sm:$0xff]  ;;  %v157_v5 = vld [vmem:[%s547_s2 + $0x18] sm:$0xff]  ;;  %v158_v6 = vld [vmem:[%s547_s2 + $0x20] sm:$0xff] }
  0x21   :  { %v159_v7 = vld [vmem:[%s547_s2 + $0x28] sm:$0xff]  ;;  %v160_v8 = vld [vmem:[%s547_s2 + $0x30] sm:$0xff]  ;;  %v161_v9 = vld [vmem:[%s547_s2 + $0x38] sm:$0xff]  ;;  %s438_s2 = smov [#allocation5]  }
  0x22   :  { %s321_s21 = sshll.u32 %s438_s2, 4  ;;  %s322_s21 = int_to_ptr.vmem [resolvable:$true] %s321_s21 }
  0x23   :  { %356 = vmatpush1.bf16.msra.mxu0 %v355_v26  ;;  %s408_s24 = scalar_lea.vmem %s322_s21, 2048  ;;  %p413_p9 = scmp.lt.s32.totalorder %s322_s21, %s322_s21 }
  0x24   :  { %358 = vmatprep.subr.bf16.mxu0 %v357_v27  ;;  %p409_p8 = scmp.ne.s32.totalorder %s322_s21, %s408_s24  ;;  %p414_p10 = scmp.lt.s32.totalorder %s408_s24, %s408_s24 }
  0x26   :  { %p415_p11 = por %p414_p10, %p413_p9 }
  0x27   :  { %360 = vmatpush1.bf16.msra.mxu0 %v359_v32 }
  0x28   :  { %362 = vmatprep.subr.bf16.mxu0 %v361_v33  ;;  %p416_p12 = pnand %p415_p11, %p409_p8 }
  0x2b   :  { %364 = vmatpush1.bf16.msra.mxu0 %v363_v38 }
  0x2c   :  { %366 = vmatprep.subr.bf16.mxu0 %v365_v39 }
  0x2f   :  { %368 = vmatpush1.bf16.msra.mxu0 %v367_v44 }
  0x30   :  { %370 = vmatprep.subr.bf16.mxu0 %v369_v45 }
  0x33   :  { %372 = vmatpush1.bf16.msra.mxu0 %v371_v48 }
  0x36   :  { %130 = vmatmul.mubr.f32.vlgmr.msra.gmra.mrb[0].mxu0 %v29_v49 }
  0x37   :  { %135 = vmatprep.mubr.f32.mxu0 %v437_v0 }
  0x3a   :  { %136 = vmatmul.mubr.f32.gmra.mrb[2].mxu0 %v30_v50 }
  0x3b   :  { %141 = vmatprep.mubr.f32.mxu0 %v437_v0 }
  0x3e   :  { %142 = vmatmul.mubr.f32.gmra.mrb[4].mxu0 %v31_v51 }
  0x3f   :  { %147 = vmatprep.mubr.f32.mxu0 %v437_v0 }
  0x42   :  { %148 = vmatmul.mubr.f32.gmra.mrb[6].mxu0 %v32_v52 }
 0x109   :  { %v131_v53 = vpop.f32.mrb[0].mxu0 }
 0x10a   :  { %v133_v54 = vpop.f32.mrb[1].mxu0 }
 0x10d   :  { %v137_v55 = vpop.f32.mrb[2].mxu0 }
 0x10e   :  { %v375_v56 = vpack.c.bf16 %v137_v55, %v131_v53  ;;  %v139_v57 = vpop.f32.mrb[3].mxu0 }
 0x10f   :  { %v373_v58 = vpack.c.bf16 %v139_v57, %v133_v54 }
 0x111   :  { %v143_v59 = vpop.f32.mrb[4].mxu0  ;;  %374 = vmatprep.subr.bf16.mxu1 %v373_v58 }
 0x112   :  { %v145_v60 = vpop.f32.mrb[5].mxu0  ;;  %376 = vmatpush1.bf16.msra.mxu1 %v375_v56 }
 0x115   :  { %v149_v61 = vpop.f32.mrb[6].mxu0 }
 0x116   :  { %v379_v62 = vpack.c.bf16 %v149_v61, %v143_v59  ;;  %v151_v63 = vpop.f32.mrb[7].mxu0 }
 0x117   :  { %v377_v1 = vpack.c.bf16 %v151_v63, %v145_v60 }
 0x119   :  { %378 = vmatprep.subr.bf16.mxu1 %v377_v1 }
 0x11a   :  { %380 = vmatpush1.bf16.msra.mxu1 %v379_v62 }
 0x11d   :  { %333 = vmatmul.mubr.msk.f32.vlgmr.msra.gmra.mrb[0].mxu1 %vm162_vm0, %v154_v2 }
 0x11e   :  { %257 = vmatprep.mubr.f32.mxu1 %v437_v0 }
 0x121   :  { %334 = vmatmul.mubr.msk.f32.gmra.mrb[2].mxu1 %vm162_vm0, %v155_v3 }
 0x122   :  { %263 = vmatprep.mubr.f32.mxu1 %v437_v0 }
 0x125   :  { %335 = vmatmul.mubr.msk.f32.gmra.mrb[4].mxu1 %vm162_vm0, %v156_v4 }
 0x126   :  { %269 = vmatprep.mubr.f32.mxu1 %v437_v0 }
 0x129   :  { %336 = vmatmul.mubr.msk.f32.gmra.mrb[6].mxu1 %vm162_vm0, %v157_v5 }
 0x12a   :  { %275 = vmatprep.mubr.f32.mxu1 %v437_v0 }
 0x12d   :  { %337 = vmatmul.mubr.msk.f32.gmra.mrb[8].mxu1 %vm162_vm0, %v158_v6 }
 0x12e   :  { %281 = vmatprep.mubr.f32.mxu1 %v437_v0 }
 0x131   :  { %338 = vmatmul.mubr.msk.f32.gmra.mrb[10].mxu1 %vm162_vm0, %v159_v7 }
 0x132   :  { %287 = vmatprep.mubr.f32.mxu1 %v437_v0 }
 0x135   :  { %339 = vmatmul.mubr.msk.f32.gmra.mrb[12].mxu1 %vm162_vm0, %v160_v8 }
 0x136   :  { %293 = vmatprep.mubr.f32.mxu1 %v437_v0 }
 0x139   :  { %340 = vmatmul.mubr.msk.f32.gmra.mrb[14].mxu1 %vm162_vm0, %v161_v9 }
 0x1f0   :  { %v253_v10 = vpop.f32.mrb[0].mxu1 }
 0x1f1   :  { %300 = vst [vmem:[#allocation5] sm:$0xff] %v253_v10  ;;  %v255_v11 = vpop.f32.mrb[1].mxu1 }
 0x1f2   :  { %301 = vst [vmem:[#allocation5 + $0x8] sm:$0xff] %v255_v11 }
 0x1f4   :  { %v259_v12 = vpop.f32.mrb[2].mxu1 }
 0x1f5   :  { %302 = vst [vmem:[#allocation5 + $0x10] sm:$0xff] %v259_v12  ;;  %v261_v13 = vpop.f32.mrb[3].mxu1 }
 0x1f6   :  { %303 = vst [vmem:[#allocation5 + $0x18] sm:$0xff] %v261_v13 }
 0x1f8   :  { %v265_v14 = vpop.f32.mrb[4].mxu1 }
 0x1f9   :  { %304 = vst [vmem:[#allocation5 + $0x20] sm:$0xff] %v265_v14  ;;  %v267_v15 = vpop.f32.mrb[5].mxu1 }
 0x1fa   :  { %305 = vst [vmem:[#allocation5 + $0x28] sm:$0xff] %v267_v15 }
 0x1fc   :  { %v271_v16 = vpop.f32.mrb[6].mxu1 }
 0x1fd   :  { %306 = vst [vmem:[#allocation5 + $0x30] sm:$0xff] %v271_v16  ;;  %v273_v0 = vpop.f32.mrb[7].mxu1 }
 0x1fe   :  { %307 = vst [vmem:[#allocation5 + $0x38] sm:$0xff] %v273_v0 }
 0x200   :  { %v277_v17 = vpop.f32.mrb[8].mxu1 }
 0x201   :  { %308 = vst [vmem:[#allocation5 + $0x40] sm:$0xff] %v277_v17  ;;  %v279_v18 = vpop.f32.mrb[9].mxu1 }
 0x202   :  { %309 = vst [vmem:[#allocation5 + $0x48] sm:$0xff] %v279_v18 }
 0x204   :  { %v283_v19 = vpop.f32.mrb[10].mxu1 }
 0x205   :  { %310 = vst [vmem:[#allocation5 + $0x50] sm:$0xff] %v283_v19  ;;  %v285_v20 = vpop.f32.mrb[11].mxu1 }
 0x206   :  { %311 = vst [vmem:[#allocation5 + $0x58] sm:$0xff] %v285_v20 }
 0x208   :  { %v289_v21 = vpop.f32.mrb[12].mxu1 }
 0x209   :  { %312 = vst [vmem:[#allocation5 + $0x60] sm:$0xff] %v289_v21  ;;  %v291_v22 = vpop.f32.mrb[13].mxu1 }
 0x20a   :  { %313 = vst [vmem:[#allocation5 + $0x68] sm:$0xff] %v291_v22 }
 0x20c   :  { %v295_v23 = vpop.f32.mrb[14].mxu1 }
 0x20d   :  { %314 = vst [vmem:[#allocation5 + $0x70] sm:$0xff] %v295_v23  ;;  %v297_v24 = vpop.f32.mrb[15].mxu1 }
 0x20e   :  { %315 = vst [vmem:[#allocation5 + $0x78] sm:$0xff] %v297_v24 }
 0x20f   :  { %419 = shalt.err (!%p416_p12)
}
 0x210   :  { %s420_s26 = scalar_lea.hbm %s548_s3, 2048 }
 0x211   :  { %p421_p13 = scmp.ne.s32.totalorder %s548_s3, %s420_s26  ;;  %p424_p0 = scmp.lt.u32.totalorder %s420_s26, %s548_s3 }
 0x213   :  { %p426_p1 = pnand %p424_p0, %p421_p13 }
 0x215   :  { %429 = shalt.err (!%p426_p1)
}
 0x216   :  { %327 = dma.vmem_to_hbm [thread:$0]  %s322_s21, 2048, %s548_s3, [#allocation4], %s435_s22, %s435_s22, %s436_s23  }
 0x217   :  { %432 = dma.done.wait [#allocation4], 2048  }
 0x218   :  { %433 = vsyncadd [#allocation4], 4294965248 }
 0x219   :  { %331 = vsyncpa [#allocation3], 1 }
 0x21a   :  { %332 = vsyncpa [#allocation4], 1 }

</bundles_post_ra>
